<compile_context>
chip_gen: v7x
topology: tpu7x:2x2x1
jax: 0.10.0
libtpu: 0.0.40
codegen_flags: <defaults>
</compile_context>

<pallas_src>
import jax
import jax.numpy as jnp
from jax.experimental import pallas as pl
from jax.experimental.pallas import tpu as pltpu

EPS = 1e-5


def _se3norm_sum_kernel(pos_ref, sum_ref):
    """pos_ref: VMEM (D, bb, N); sum_ref: VMEM (bb, 1) = sum_N ||pos_n||_2."""
    p = pos_ref[...].astype(jnp.float32)        # reduce in f32 even for bf16 in
    sq = p * p                                  # (D, bb, N)
    sumsq = sq[0]                               # leading-dim adds: dense vregs
    for d in range(1, sq.shape[0]):
        sumsq = sumsq + sq[d]                   # (bb, N)
    norm = jnp.sqrt(sumsq)                      # per-node L2 norm
    sum_ref[...] = jnp.sum(norm, axis=1, keepdims=True)    # lane reduce (bb, 1)


def _round_up(x, m):
    return -(-x // m) * m


def _pick_block_b(B, N, itemsize, target_bytes=4 << 20):
    """Batch rows per grid step (a multiple of 8, or the full batch).

    VMEM accounting matches what Mosaic actually allocates: the (3, bb, N)
    input block pads bb to a multiple of 8 sublanes and N to a multiple of 128
    lanes and is double-buffered; the (bb, 1) f32 output block pads to
    (8k, 128) and is double-buffered as well.
    """
    n_lanes = _round_up(max(N, 1), 128)
    per_group = 2 * 3 * 8 * n_lanes * itemsize + 2 * 8 * 128 * 4  # per 8 rows
    groups = max(1, target_bytes // per_group)
    bb = 8 * groups
    if bb >= B:
        # Whole batch fits in one step.  Still prefer >= 2 grid steps on the
        # 'parallel' axis so both v7x TensorCores get work (needs B >= 16 so
        # the sublane block stays a multiple of 8).
        half = 8 * ((B // 2) // 8)
        return half if half >= 8 else B
    return bb


def se3norm(pos, node_mask, weight, *, block_b=None, eps=EPS):
    """pos: (B, N, D=3) float, node_mask: (B, N, 1), weight: (1,)."""
    B, N, D = pos.shape

    # One XLA copy: (B, N, D) -> (D, B, N) so the node axis is lane-dense and
    # the xyz axis is the untiled outermost dim.  No pad copy: the kernel block
    # spans the full node dim.
    pos_t = jnp.transpose(pos, (2, 0, 1))

    bb = block_b if block_b is not None else _pick_block_b(
        B, N, pos_t.dtype.itemsize)
    # Trailing partial block (when bb does not divide B) is safe: rows are
    # reduced independently and out-of-bounds rows are masked on the write.
    grid = (pl.cdiv(B, bb),)

    sum_norm = pl.pallas_call(
        _se3norm_sum_kernel,
        out_shape=jax.ShapeDtypeStruct((B, 1), jnp.float32),
        grid_spec=pl.GridSpec(
            grid=grid,
            in_specs=[pl.BlockSpec((D, bb, N), lambda i: (0, i, 0))],
            out_specs=pl.BlockSpec((bb, 1), lambda i: (i, 0)),
        ),
        compiler_params=pltpu.CompilerParams(
            dimension_semantics=("parallel",),
            vmem_limit_bytes=32 * 1024 * 1024,
        ),
    )(pos_t)                                                 # (B, 1) f32

    # Scalar epilogue + broadcast multiply in the caller's layout; XLA fuses
    # this into one elementwise pass over pos (no extra transpose / slice).
    counts = jnp.sum(node_mask.astype(jnp.float32), axis=1, keepdims=True)   # (B,1,1)
    # Note: counts == 0 (fully padded batch element) yields Inf/NaN, exactly
    # like the PyTorch reference.
    mean_norm = sum_norm.reshape(B, 1, 1) / counts                           # (B,1,1)
    new_pos = (weight.astype(jnp.float32) * pos.astype(jnp.float32)
               / (mean_norm + eps))
    return new_pos.astype(pos.dtype)


def se3norm_ref(pos, node_mask, weight):
    """Pure-JAX reference mirroring the PyTorch forward exactly."""
    norm = jnp.linalg.norm(pos, axis=-1, keepdims=True)
    mean_norm = jnp.sum(norm, axis=1, keepdims=True) / jnp.sum(
        node_mask, axis=1, keepdims=True
    )
    return weight * pos / (mean_norm + EPS)


if __name__ == "__main__":
    key = jax.random.PRNGKey(0)
    B, N, D = 2, 8, 3

    kpos, kmask = jax.random.split(key)
    pos = jax.random.normal(kpos, (B, N, D), dtype=jnp.float32)

    # Boolean-style node mask (last few nodes padded out), as float for sums.
    n_valid = jnp.array([N, N - 3], dtype=jnp.int32)
    node_mask = (jnp.arange(N)[None, :] < n_valid[:, None]).astype(jnp.float32)
    node_mask = node_mask[..., None]                          # (B, N, 1)
    # Zero padded positions, matching the usual MiDi convention.
    pos = pos * node_mask

    # Parameter init per __init__: weight = ones((1,))
    weight = jnp.ones((1,), dtype=jnp.float32)

    out = se3norm(pos, node_mask, weight)
    out = jax.block_until_ready(out)

    ref = se3norm_ref(pos, node_mask, weight)
    assert out.shape == (B, N, D)
    assert jnp.allclose(out, ref, atol=1e-5, rtol=1e-5), "mismatch vs reference"

    print("KERNEL_OK")
</pallas_src>

<mosaic_0001>
module attributes {stable_mosaic.version = 11 : i64} {
  func.func @_se3norm_sum_kernel(%arg0: i32, %arg1: memref<3x2x8xf32, #tpu.memory_space<vmem>>, %arg2: memref<2x1xf32, #tpu.memory_space<vmem>>) attributes {dimension_semantics = [#tpu.dimension_semantics<parallel>], iteration_bounds = array<i64: 1>, scalar_prefetch = 0 : i64, scratch_operands = 0 : i64, tpu.core_type = #tpu.core_type<tc>, window_params = [{transform_indices = @transform_0, window_bounds = array<i64: 3, 2, 8>}, {transform_indices = @transform_1, window_bounds = array<i64: 2, 1>}]} {
    %c0 = arith.constant 0 : index
    %c0_0 = arith.constant 0 : index
    %c0_1 = arith.constant 0 : index
    %0 = vector.load %arg1[%c0, %c0_0, %c0_1] : memref<3x2x8xf32, #tpu.memory_space<vmem>>, vector<3x2x8xf32>
    %1 = arith.mulf %0, %0 : vector<3x2x8xf32>
    %2 = vector.extract_strided_slice %1 {offsets = [0, 0, 0], sizes = [1, 2, 8], strides = [1, 1, 1]} : vector<3x2x8xf32> to vector<1x2x8xf32>
    %3 = vector.shape_cast %2 : vector<1x2x8xf32> to vector<2x8xf32>
    %4 = vector.extract_strided_slice %1 {offsets = [1, 0, 0], sizes = [1, 2, 8], strides = [1, 1, 1]} : vector<3x2x8xf32> to vector<1x2x8xf32>
    %5 = vector.shape_cast %4 : vector<1x2x8xf32> to vector<2x8xf32>
    %6 = arith.addf %3, %5 : vector<2x8xf32>
    %7 = vector.extract_strided_slice %1 {offsets = [2, 0, 0], sizes = [1, 2, 8], strides = [1, 1, 1]} : vector<3x2x8xf32> to vector<1x2x8xf32>
    %8 = vector.shape_cast %7 : vector<1x2x8xf32> to vector<2x8xf32>
    %9 = arith.addf %6, %8 : vector<2x8xf32>
    %10 = math.sqrt %9 : vector<2x8xf32>
    %cst = arith.constant dense<0.000000e+00> : vector<2xf32>
    %11 = vector.multi_reduction <add>, %10, %cst [1] : vector<2x8xf32> to vector<2xf32>
    %12 = vector.shape_cast %11 : vector<2xf32> to vector<2x1xf32>
    %c0_2 = arith.constant 0 : index
    %c0_3 = arith.constant 0 : index
    %13 = vector.load %arg2[%c0_2, %c0_3] : memref<2x1xf32, #tpu.memory_space<vmem>>, vector<2x1xf32>
    tpu.vector_store %arg2[%c0_2, %c0_3], %12 {strides = array<i32>} : memref<2x1xf32, #tpu.memory_space<vmem>>, vector<2x1xf32>,
    return
  }
  func.func @transform_0(%arg0: i32) -> (i32, i32, i32) {
    %c0_i32 = arith.constant 0 : i32
    %c0_i32_0 = arith.constant 0 : i32
    %c0_i32_1 = arith.constant 0 : i32
    return %c0_i32, %arg0, %c0_i32_0 : i32, i32, i32
  }
  func.func @transform_1(%arg0: i32) -> (i32, i32) {
    %c0_i32 = arith.constant 0 : i32
    %c0_i32_0 = arith.constant 0 : i32
    return %arg0, %c0_i32 : i32, i32
  }
}

</mosaic_0001>

<bundles_post_ra>
// kernel: tpu_custom_call.1
= control target key start
LH: loop header
LB: loop body
LE: loop exit
PB: predicated region body
PF: predicated region fallthrough
CT: control target
= control target key end

     0   :  { %6 = vsyncpa [#allocation3], 0  ;;  %s77_s6 = smov [#allocation2]   ;;  %s105_s0 = inlined_call_operand.hbm [shape: f32[3,2,8], index: 0, kind: input, shape index: {}]   ;;  %s106_s1 = inlined_call_operand.vmem [shape: f32[2,1], index: 1, kind: output, shape index: {}]  }
   0x1   :  { %s12_s7 = sshll.u32 %s77_s6, 4  ;;  %s53_s10 = scalar_lea.hbm %s105_s0, 96  ;;  %s13_s7 = int_to_ptr.vmem [resolvable:$true] %s12_s7 }
   0x2   :  { %p54_p0 = scmp.ne.s32.totalorder %s105_s0, %s53_s10  ;;  %p57_p1 = scmp.lt.u32.totalorder %s53_s10, %s105_s0 }
   0x4   :  { %p59_p2 = pnand %p57_p1, %p54_p0 }
   0x6   :  { %62 = shalt.err (!%p59_p2)
}
   0x7   :  { %s63_s15 = scalar_lea.vmem %s13_s7, 96  ;;  %p68_p4 = scmp.lt.s32.totalorder %s13_s7, %s13_s7 }
   0x8   :  { %p64_p3 = scmp.ne.s32.totalorder %s13_s7, %s63_s15  ;;  %p69_p5 = scmp.lt.s32.totalorder %s63_s15, %s63_s15 }
   0xa   :  { %p70_p6 = por %p69_p5, %p68_p4 }
   0xc   :  { %p71_p7 = pnand %p70_p6, %p64_p3 }
   0xe   :  { %74 = shalt.err (!%p71_p7)
}
   0xf   :  { %s78_s16 = smov 32   ;;  %s79_s17 = smov 2  }
  0x10   :  { %18 = dma.hbm_to_vmem [thread:$0]  %s105_s0, 96, %s13_s7, [#allocation3], %s78_s16, %s78_s16, %s79_s17  }
  0x11   :  { %75 = dma.done.wait [#allocation3], 96  }
  0x12   :  { %76 = vsyncadd [#allocation3], 4294967200  ;;  %v22_v0 = vld [vmem:[#allocation2] sm:$0x3]  ;;  %v23_v1 = vld [vmem:[#allocation2 + $0x2] sm:$0x3] }
  0x13   :  { %v24_v2 = vld [vmem:[#allocation2 + $0x4] sm:$0x3]  ;;  %v25_v3 = vmul.f32 %v22_v0, %v22_v0  ;;  %v26_v4 = vmul.f32 %v23_v1, %v23_v1  ;;  %vm37_vm2 = vcmask 58368   ;;  %vm41_vm3 = vcmask 1024  }
  0x14   :  { %v27_v5 = vmul.f32 %v24_v2, %v24_v2 }
  0x15   :  { %v28_v6 = vadd.f32 %v26_v4, %v25_v3 }
  0x17   :  { %v29_v7 = vadd.f32 %v28_v6, %v27_v5 }
  0x19   :  { %51 = vrsqrt.f32 %v29_v7  ;;  %vm32_vm0 = vcmp.eq.f32.partialorder %v29_v7, inf  ;;  %v35_v9 = vand.u32 2147483648, %v29_v7  ;;  %vm34_vm1 = vcmp.eq.f32.partialorder %v29_v7, 0.0 }
  0x23   :  { %v52_v8 = vpop.eup %51 }
  0x24   :  { %v31_v10 = vmul.f32 %v52_v8, %v29_v7 }
  0x26   :  { %v33_v11 = vsel %vm32_vm0, %v29_v7, %v31_v10 }
  0x27   :  { %v36_v12 = vsel %vm34_vm1, %v35_v9, %v33_v11 }
  0x28   :  { %v38_v13 = vsel %vm37_vm2, %v36_v12, 0.0 }
  0x29   :  { %39 = vadd.xlane.f32.xlu0 %v38_v13 }
  0xb6   :  { %v40_v14 = vpop.xlane.xlu0 %39 }
  0xb7   :  { %42 = vst.msk [vmem:[%s106_s1] sm:$0x3] %vm41_vm3, %v40_v14 }
  0xb8   :  { %47 = vsyncpa [#allocation3], 1 }

</bundles_post_ra>
